<compile_context>
chip_gen: v5e
topology: v5e:2x2
jax: 0.10.0
libtpu: 0.0.40
codegen_flags: <defaults>
</compile_context>

<pallas_src>
import functools

import jax
import jax.numpy as jnp
from jax.experimental import pallas as pl
from jax.experimental.pallas import tpu as pltpu

GAMMA = 2.0
ALPHA = 0.75
_LANES = 128
_SUBLANES = 8
_MAX_TILE_ROWS = 4096   # (4096,128) f32 = 2 MiB per pipeline buffer
_NUM_CORE_SPLITS = 2    # leading "parallel" axis -> both TCs on v7x; no-op on v5e/v6e


def _vfl_elementwise_f32(pred, gt, label, gamma, alpha):
    """Per-element varifocal loss term, all math in f32."""
    sig = jax.nn.sigmoid(pred)
    focal = sig * sig if gamma == 2.0 else sig ** gamma
    weight = alpha * focal * (1.0 - label) + gt * label
    # Numerically stable BCE-with-logits reusing the sigmoid:
    #   max(x,0) - x*z + log1p(exp(-|x|)),  log1p(exp(-|x|)) == -log(max(sig, 1-sig))
    bce = jnp.maximum(pred, 0.0) - pred * gt - jnp.log(jnp.maximum(sig, 1.0 - sig))
    return bce * weight


def _vfl_tile_kernel(pred_ref, gt_ref, label_ref, acc_ref, *,
                     tile_rows, n_rows, tiles_per_core, gamma, alpha):
    c = pl.program_id(0)   # core-split ("parallel") axis
    i = pl.program_id(1)   # streaming ("arbitrary") axis

    @pl.when(i == 0)
    def _init():
        acc_ref[...] = jnp.zeros_like(acc_ref)

    pred = pred_ref[...].astype(jnp.float32)
    gt = gt_ref[...].astype(jnp.float32)
    label = label_ref[...].astype(jnp.float32)

    weighted = _vfl_elementwise_f32(pred, gt, label, gamma, alpha)

    start_row = (c * tiles_per_core + i) * tile_rows

    def _accumulate(w):
        if tile_rows % _SUBLANES == 0:
            # (tile_rows,128) -> (tile_rows/8, 8, 128): per-vreg adds only, no per-step
            # cross-sublane reduce; the final 8->1 fold happens once in the wrapper.
            acc_ref[...] += jnp.sum(
                w.reshape(tile_rows // _SUBLANES, _SUBLANES, _LANES), axis=0)
        else:
            # Tiny single-tile fallback (full-dim block with rows % 8 != 0).
            acc_ref[0:1, :] += jnp.sum(w, axis=0, keepdims=True)

    @pl.when(start_row + tile_rows <= n_rows)
    def _full_tile():
        _accumulate(weighted)

    @pl.when(start_row + tile_rows > n_rows)
    def _ragged_tile():
        # Last (or clamped fully-out-of-range) tile: mask rows past the array end.
        r = jax.lax.broadcasted_iota(jnp.int32, weighted.shape, 0)
        _accumulate(jnp.where(r < (n_rows - start_row), weighted, 0.0))


def varifocal_loss(pred_score, gt_score, label, *, gamma=GAMMA, alpha=ALPHA,
                   max_tile_rows=_MAX_TILE_ROWS):
    assert pred_score.shape == gt_score.shape == label.shape
    assert pred_score.ndim == 3, "expected (batch, anchors, classes)"
    assert int(pred_score.size) < 2 ** 31, "int32 in-kernel row indexing"
    _, A, _ = pred_score.shape
    total = int(pred_score.size)

    n_rows = total // _LANES
    n_main = n_rows * _LANES

    pred_f = jnp.ravel(pred_score)
    gt_f = jnp.ravel(gt_score)
    lab_f = jnp.ravel(label)

    # Sub-128 remainder (rare): tiny plain-jnp contribution.  This (not jnp.pad) keeps
    # the bandwidth-bound kernel free of extra full-array HBM copies.
    if n_main != total:
        rem_sum = jnp.sum(_vfl_elementwise_f32(
            pred_f[n_main:].astype(jnp.float32),
            gt_f[n_main:].astype(jnp.float32),
            lab_f[n_main:].astype(jnp.float32),
            float(gamma), float(alpha)))
    else:
        rem_sum = jnp.float32(0.0)

    if n_rows == 0:
        return rem_sum / jnp.float32(A)

    def _slab(x_flat):
        if n_main != total:
            x_flat = x_flat[:n_main]
        return x_flat.reshape(n_rows, _LANES)   # contiguous -> free bitcast reshape

    if n_rows <= int(max_tile_rows):
        # Single tile spanning all rows: a full-dim block is always a legal tile.
        tile_rows = n_rows
    else:
        # Multiple of 32 so bf16 (16,128) / int8 (32,128) packed min-tiles also lower.
        tile_rows = max(32, (int(max_tile_rows) // 32) * 32)

    num_tiles = pl.cdiv(n_rows, tile_rows)
    nc = _NUM_CORE_SPLITS
    tiles_per_core = pl.cdiv(num_tiles, nc)
    last_tile = num_tiles - 1

    def _in_map(c, i):
        # Clamp so the (at most nc-1) surplus grid steps re-read a valid block; their
        # contribution is zeroed by the ragged-tile mask in the kernel.
        return (jnp.minimum(c * tiles_per_core + i, last_tile), 0)

    in_spec = pl.BlockSpec((tile_rows, _LANES), _in_map)

    kernel = functools.partial(
        _vfl_tile_kernel, tile_rows=tile_rows, n_rows=n_rows,
        tiles_per_core=tiles_per_core, gamma=float(gamma), alpha=float(alpha))

    acc = pl.pallas_call(
        kernel,
        out_shape=jax.ShapeDtypeStruct((nc * _SUBLANES, _LANES), jnp.float32),
        grid_spec=pltpu.PrefetchScalarGridSpec(
            num_scalar_prefetch=0,
            grid=(nc, tiles_per_core),
            in_specs=[in_spec, in_spec, in_spec],
            out_specs=pl.BlockSpec((_SUBLANES, _LANES), lambda c, i: (c, 0)),
        ),
        compiler_params=pltpu.CompilerParams(
            dimension_semantics=("parallel", "arbitrary"),
            vmem_limit_bytes=32 * 1024 * 1024,
        ),
    )(_slab(pred_f), _slab(gt_f), _slab(lab_f))

    # .mean(1).sum() == (sum over all elements) / A ; single fold + divide at the end.
    return (jnp.sum(acc) + rem_sum) / jnp.float32(A)


def _reference_vfl(pred_score, gt_score, label, gamma=GAMMA, alpha=ALPHA):
    pred = pred_score.astype(jnp.float32)
    gt = gt_score.astype(jnp.float32)
    lab = label.astype(jnp.float32)
    weight = alpha * jax.nn.sigmoid(pred) ** gamma * (1.0 - lab) + gt * lab
    bce = jnp.maximum(pred, 0.0) - pred * gt + jnp.log1p(jnp.exp(-jnp.abs(pred)))
    return (bce * weight).mean(axis=1).sum()


if __name__ == "__main__":
    def _make(key, shape, pred_dtype=jnp.float32):
        k1, k2, k3 = jax.random.split(key, 3)
        pred = (jax.random.normal(k1, shape, dtype=jnp.float32) * 2.0).astype(pred_dtype)
        gt = jax.random.uniform(k2, shape, dtype=jnp.float32)
        lab = (jax.random.uniform(k3, shape) > 0.8).astype(jnp.float32)
        return pred, gt, lab

    # 1) Small canonical case (batch=2, anchors=8, classes=64): single tile, 2-way grid.
    p1, g1, l1 = _make(jax.random.PRNGKey(0), (2, 8, 64))
    loss1 = varifocal_loss(p1, g1, l1)
    jax.block_until_ready(loss1)
    ref1 = _reference_vfl(p1, g1, l1)
    assert jnp.allclose(loss1, ref1, rtol=1e-5, atol=1e-5), (loss1, ref1)

    # 2) Multi-tile: exercises full tiles, the ragged last tile, and a clamped
    #    fully-out-of-range tile from the core split (800 rows, 288-row tiles).
    p2, g2, l2 = _make(jax.random.PRNGKey(1), (2, 640, 80))
    loss2 = varifocal_loss(p2, g2, l2, max_tile_rows=288)
    jax.block_until_ready(loss2)
    ref2 = _reference_vfl(p2, g2, l2)
    assert jnp.allclose(loss2, ref2, rtol=1e-4, atol=1e-4), (loss2, ref2)

    # 3) total % 128 != 0: wrapper remainder path + full-dim block with rows % 8 != 0.
    p3, g3, l3 = _make(jax.random.PRNGKey(2), (2, 70, 33))
    loss3 = varifocal_loss(p3, g3, l3)
    jax.block_until_ready(loss3)
    ref3 = _reference_vfl(p3, g3, l3)
    assert jnp.allclose(loss3, ref3, rtol=1e-5, atol=1e-5), (loss3, ref3)

    # 4) bf16 pred_score accepted directly (no wrapper upcast; kernel casts in-VMEM).
    p4, g4, l4 = _make(jax.random.PRNGKey(3), (2, 128, 64), pred_dtype=jnp.bfloat16)
    loss4 = varifocal_loss(p4, g4, l4)
    jax.block_until_ready(loss4)
    ref4 = _reference_vfl(p4, g4, l4)
    assert jnp.allclose(loss4, ref4, rtol=1e-4, atol=1e-4), (loss4, ref4)

    print("KERNEL_OK")
</pallas_src>

<mosaic_0001>
module attributes {stable_mosaic.version = 11 : i64} {
  func.func @_vfl_tile_kernel(%arg0: i32, %arg1: i32, %arg2: memref<8x128xf32, #tpu.memory_space<vmem>>, %arg3: memref<8x128xf32, #tpu.memory_space<vmem>>, %arg4: memref<8x128xf32, #tpu.memory_space<vmem>>, %arg5: memref<8x128xf32, #tpu.memory_space<vmem>>) attributes {dimension_semantics = [#tpu.dimension_semantics<parallel>, #tpu.dimension_semantics<arbitrary>], iteration_bounds = array<i64: 2, 1>, scalar_prefetch = 0 : i64, scratch_operands = 0 : i64, tpu.core_type = #tpu.core_type<tc>, window_params = [{transform_indices = @transform_0, window_bounds = array<i64: 8, 128>}, {transform_indices = @transform_1, window_bounds = array<i64: 8, 128>}, {transform_indices = @transform_2, window_bounds = array<i64: 8, 128>}, {transform_indices = @transform_3, window_bounds = array<i64: 8, 128>}]} {
    %c0_i32 = arith.constant 0 : i32
    %0 = arith.cmpi eq, %arg1, %c0_i32 : i32
    %1 = arith.extui %0 : i1 to i32
    %c0_i32_0 = arith.constant 0 : i32
    %2 = arith.cmpi ne, %1, %c0_i32_0 : i32
    scf.if %2 {
      %cst_16 = arith.constant 0.000000e+00 : f32
      %40 = vector.broadcast %cst_16 : f32 to vector<8x128xf32>
      %c0_17 = arith.constant 0 : index
      %c0_18 = arith.constant 0 : index
      %41 = vector.load %arg5[%c0_17, %c0_18] : memref<8x128xf32, #tpu.memory_space<vmem>>, vector<8x128xf32>
      tpu.vector_store %arg5[%c0_17, %c0_18], %40 {strides = array<i32>} : memref<8x128xf32, #tpu.memory_space<vmem>>, vector<8x128xf32>,
    } else {
    }
    %c0 = arith.constant 0 : index
    %c0_1 = arith.constant 0 : index
    %3 = vector.load %arg2[%c0, %c0_1] : memref<8x128xf32, #tpu.memory_space<vmem>>, vector<8x128xf32>
    %c0_2 = arith.constant 0 : index
    %c0_3 = arith.constant 0 : index
    %4 = vector.load %arg3[%c0_2, %c0_3] : memref<8x128xf32, #tpu.memory_space<vmem>>, vector<8x128xf32>
    %c0_4 = arith.constant 0 : index
    %c0_5 = arith.constant 0 : index
    %5 = vector.load %arg4[%c0_4, %c0_5] : memref<8x128xf32, #tpu.memory_space<vmem>>, vector<8x128xf32>
    %6 = arith.negf %3 : vector<8x128xf32>
    %7 = math.exp %6 : vector<8x128xf32>
    %cst = arith.constant 1.000000e+00 : f32
    %8 = vector.broadcast %cst : f32 to vector<8x128xf32>
    %9 = arith.addf %8, %7 : vector<8x128xf32>
    %10 = arith.divf %8, %9 : vector<8x128xf32>
    %11 = arith.mulf %10, %10 : vector<8x128xf32>
    %cst_6 = arith.constant 7.500000e-01 : f32
    %12 = vector.broadcast %cst_6 : f32 to vector<8x128xf32>
    %13 = arith.mulf %12, %11 : vector<8x128xf32>
    %cst_7 = arith.constant 1.000000e+00 : f32
    %14 = vector.broadcast %cst_7 : f32 to vector<8x128xf32>
    %15 = arith.subf %14, %5 : vector<8x128xf32>
    %16 = arith.mulf %13, %15 : vector<8x128xf32>
    %17 = arith.mulf %4, %5 : vector<8x128xf32>
    %18 = arith.addf %16, %17 : vector<8x128xf32>
    %cst_8 = arith.constant 0.000000e+00 : f32
    %19 = vector.broadcast %cst_8 : f32 to vector<8x128xf32>
    %20 = arith.maximumf %3, %19 : vector<8x128xf32>
    %21 = arith.mulf %3, %4 : vector<8x128xf32>
    %22 = arith.subf %20, %21 : vector<8x128xf32>
    %cst_9 = arith.constant 1.000000e+00 : f32
    %23 = vector.broadcast %cst_9 : f32 to vector<8x128xf32>
    %24 = arith.subf %23, %10 : vector<8x128xf32>
    %25 = arith.maximumf %10, %24 : vector<8x128xf32>
    %26 = math.log %25 : vector<8x128xf32>
    %27 = arith.subf %22, %26 : vector<8x128xf32>
    %28 = arith.mulf %27, %18 : vector<8x128xf32>
    %c1_i32 = arith.constant 1 : i32
    %29 = arith.muli %arg0, %c1_i32 : i32
    %30 = arith.addi %29, %arg1 : i32
    %c8_i32 = arith.constant 8 : i32
    %31 = arith.muli %30, %c8_i32 : i32
    %c8_i32_10 = arith.constant 8 : i32
    %32 = arith.addi %31, %c8_i32_10 : i32
    %c8_i32_11 = arith.constant 8 : i32
    %33 = arith.cmpi sle, %32, %c8_i32_11 : i32
    %34 = arith.extui %33 : i1 to i32
    %c0_i32_12 = arith.constant 0 : i32
    %35 = arith.cmpi ne, %34, %c0_i32_12 : i32
    scf.if %35 {
      %c0_16 = arith.constant 0 : index
      %c0_17 = arith.constant 0 : index
      %40 = vector.load %arg5[%c0_16, %c0_17] : memref<8x128xf32, #tpu.memory_space<vmem>>, vector<8x128xf32>
      %41 = vector.shape_cast %28 : vector<8x128xf32> to vector<1x8x128xf32>
      %cst_18 = arith.constant dense<0.000000e+00> : vector<8x128xf32>
      %42 = vector.multi_reduction <add>, %41, %cst_18 [0] : vector<1x8x128xf32> to vector<8x128xf32>
      %43 = arith.addf %40, %42 : vector<8x128xf32>
      %c0_19 = arith.constant 0 : index
      %c0_20 = arith.constant 0 : index
      %44 = vector.load %arg5[%c0_19, %c0_20] : memref<8x128xf32, #tpu.memory_space<vmem>>, vector<8x128xf32>
      tpu.vector_store %arg5[%c0_19, %c0_20], %43 {strides = array<i32>} : memref<8x128xf32, #tpu.memory_space<vmem>>, vector<8x128xf32>,
    } else {
    }
    %c8_i32_13 = arith.constant 8 : i32
    %36 = arith.addi %31, %c8_i32_13 : i32
    %c8_i32_14 = arith.constant 8 : i32
    %37 = arith.cmpi sgt, %36, %c8_i32_14 : i32
    %38 = arith.extui %37 : i1 to i32
    %c0_i32_15 = arith.constant 0 : i32
    %39 = arith.cmpi ne, %38, %c0_i32_15 : i32
    scf.if %39 {
      %40 = tpu.iota {dimensions = array<i32: 0>} : vector<8x128xi32>
      %c8_i32_16 = arith.constant 8 : i32
      %41 = arith.subi %c8_i32_16, %31 : i32
      %42 = vector.broadcast %41 : i32 to vector<8x128xi32>
      %43 = arith.cmpi slt, %40, %42 : vector<8x128xi32>
      %cst_17 = arith.constant 0.000000e+00 : f32
      %44 = vector.broadcast %cst_17 : f32 to vector<8x128xf32>
      %45 = arith.select %43, %28, %44 : vector<8x128xi1>, vector<8x128xf32>
      %c0_18 = arith.constant 0 : index
      %c0_19 = arith.constant 0 : index
      %46 = vector.load %arg5[%c0_18, %c0_19] : memref<8x128xf32, #tpu.memory_space<vmem>>, vector<8x128xf32>
      %47 = vector.shape_cast %45 : vector<8x128xf32> to vector<1x8x128xf32>
      %cst_20 = arith.constant dense<0.000000e+00> : vector<8x128xf32>
      %48 = vector.multi_reduction <add>, %47, %cst_20 [0] : vector<1x8x128xf32> to vector<8x128xf32>
      %49 = arith.addf %46, %48 : vector<8x128xf32>
      %c0_21 = arith.constant 0 : index
      %c0_22 = arith.constant 0 : index
      %50 = vector.load %arg5[%c0_21, %c0_22] : memref<8x128xf32, #tpu.memory_space<vmem>>, vector<8x128xf32>
      tpu.vector_store %arg5[%c0_21, %c0_22], %49 {strides = array<i32>} : memref<8x128xf32, #tpu.memory_space<vmem>>, vector<8x128xf32>,
    } else {
    }
    return
  }
  func.func @transform_0(%arg0: i32, %arg1: i32) -> (i32, i32) {
    %c1_i32 = arith.constant 1 : i32
    %0 = arith.muli %arg0, %c1_i32 : i32
    %1 = arith.addi %0, %arg1 : i32
    %c0_i32 = arith.constant 0 : i32
    %2 = arith.minsi %1, %c0_i32 : i32
    %c0_i32_0 = arith.constant 0 : i32
    %c0_i32_1 = arith.constant 0 : i32
    return %2, %c0_i32_0 : i32, i32
  }
  func.func @transform_1(%arg0: i32, %arg1: i32) -> (i32, i32) {
    %c1_i32 = arith.constant 1 : i32
    %0 = arith.muli %arg0, %c1_i32 : i32
    %1 = arith.addi %0, %arg1 : i32
    %c0_i32 = arith.constant 0 : i32
    %2 = arith.minsi %1, %c0_i32 : i32
    %c0_i32_0 = arith.constant 0 : i32
    %c0_i32_1 = arith.constant 0 : i32
    return %2, %c0_i32_0 : i32, i32
  }
  func.func @transform_2(%arg0: i32, %arg1: i32) -> (i32, i32) {
    %c1_i32 = arith.constant 1 : i32
    %0 = arith.muli %arg0, %c1_i32 : i32
    %1 = arith.addi %0, %arg1 : i32
    %c0_i32 = arith.constant 0 : i32
    %2 = arith.minsi %1, %c0_i32 : i32
    %c0_i32_0 = arith.constant 0 : i32
    %c0_i32_1 = arith.constant 0 : i32
    return %2, %c0_i32_0 : i32, i32
  }
  func.func @transform_3(%arg0: i32, %arg1: i32) -> (i32, i32) {
    %c0_i32 = arith.constant 0 : i32
    %c0_i32_0 = arith.constant 0 : i32
    return %arg0, %c0_i32 : i32, i32
  }
}

</mosaic_0001>

<bundles_post_ra>
// kernel: tpu_custom_call.1
= control target key start
LH: loop header
LB: loop body
LE: loop exit
PB: predicated region body
PF: predicated region fallthrough
CT: control target
= control target key end

     0   :  { %s1079_s0 = inlined_call_operand.hbm [shape: f32[8,128], index: 0, kind: input, shape index: {}]   ;;  %s1080_s1 = inlined_call_operand.hbm [shape: f32[8,128], index: 1, kind: input, shape index: {}]   ;;  %s1081_s2 = inlined_call_operand.hbm [shape: f32[8,128], index: 2, kind: input, shape index: {}]   ;;  %s1082_s3 = inlined_call_operand.hbm [shape: f32[16,128], index: 3, kind: output, shape index: {}]  }
   0x1   :  { %1084 = sst [smem:[#allocation13_spill]] %s1080_s1 }
   0x2   :  { %8 = vsyncpa [#allocation3], 0 }
   0x3   :  { %10 = vsyncpa [#allocation3 + $0x1], 0 }
   0x4   :  { %11 = vsyncpa [#allocation6], 0 }
   0x5   :  { %13 = vsyncpa [#allocation6 + $0x1], 0 }
   0x6   :  { %14 = vsyncpa [#allocation4], 0 }
   0x7   :  { %16 = vsyncpa [#allocation4 + $0x1], 0  ;;  %s864_s12 = smov 0   ;;  %s866_s13 = smov 0  }
   0x8   :  { %s868_s14 = smov 0   ;;  %s870_s15 = smov 0  }
   0x9   :  { %s872_s16 = smov 0   ;;  %s874_s17 = smov 0  }
   0xa   :  { %s876_s18 = smov 0   ;;  %s878_s19 = smov 0  }
   0xb LB: > { %s903_s20 = sadd.s32 4294967295, %s838_s19   ;;  %s516_s21 = sadd.s32 4294967294, %s838_s19   ;;  %s838_s19 = sphi %s878_s19, %s22_s19   ;;  %s834_s18 = sphi %s876_s18, %s1099_s18   ;;  %s830_s17 = sphi %s874_s17, %s1098_s17   ;;  %s826_s16 = sphi %s872_s16, %s1069_s16   ;;  %s822_s15 = sphi %s870_s15, %s1097_s15   ;;  %s818_s14 = sphi %s868_s14, %s1096_s14   ;;  %s814_s13 = sphi %s866_s13, %s1095_s13   ;;  %s810_s12 = sphi %s864_s12, %s1094_s12  }
   0xc   : > { %s34_s22 = sadd.s32 1, %s834_s18  ;;  %p807_p1 = scmp.ne.s32.totalorder %s826_s16, 0 }
   0xd   : > { %p36_p0 = scmp.ge.s32.totalorder %s34_s22, 2  ;;  %p55_p2 = scmp.eq.s32.totalorder %s838_s19, 0 }
   0xe   : > { %p60_p3 = scmp.ne.s32.totalorder %s826_s16, %s822_s15  ;;  %p61_p5 = scmp.eq.s32.totalorder %s903_s20, 0 }
   0xf   : > { %s1101_s22 = smov (%p36_p0, %s34_s22), 0  ;;  %p912_p4 = por %p807_p1, %p55_p2 }
  0x10   : > { %1085 = sst [smem:[#allocation12_spill]] %s1101_s22  ;;  %p917_p6 = por %p61_p5, %p60_p3 }
  0x11   : > { %s134_s25 = ssub.s32 %s834_s18, %s1101_s22  ;;  %s137_s26 = sadd.s32 1, %s818_s14 }
  0x12   : > { %p135_p7 = scmp.eq.s32.totalorder %s134_s25, 0  ;;  %p147_p8 = scmp.ne.s32.totalorder %s818_s14, %s814_s13 }
  0x13   : > { %p148_p9 = scmp.eq.s32.totalorder %s903_s20, 1  ;;  %p153_p10 = scmp.ne.s32.totalorder %s814_s13, %s810_s12 }
  0x14   : > { %s925_s27 = scalar_select %p135_p7, %s818_s14, %s137_s26  }
  0x15   : > { %p154_p11 = scmp.eq.s32.totalorder %s516_s21, 1  ;;  %p932_p12 = por %p148_p9, %p147_p8 }
  0x16   : > { %p518_p13 = scmp.ge.s32.totalorder %s838_s19, 2  ;;  %p560_p1 = scmp.lt.s32.totalorder %s838_s19, 2 }
  0x17   : > { %p937_p0 = por %p154_p11, %p153_p10  ;;  %s196_s4 = sand.u32 1, %s838_s19  }
  0x18   : > { %p944_p2 = pnand %p560_p1, %p912_p4  ;;  %s840_s5 = smov [#allocation5]  }
  0x19   : > { %s211_s6 = sshll.u32 %s840_s5, 4  ;;  %s1091_s1 = sld [smem:[#allocation13_spill]]  ;;  %s212_s6 = int_to_ptr.vmem [resolvable:$true] %s211_s6 }
  0x1a   : > { %p525_p3 = scmp.ge.s32.totalorder %s838_s19, 1  ;;  %s953_s10 = scalar_lea.sflag [#allocation6], %s196_s4 }
  0x1b   : > { %p645_p5 = pneg %p944_p2 }
  0x1f   : > { %s209_s9 = sshll.u32 %s1091_s1, 4  ;;  %s648_s25 = scalar_lea.hbm %s1091_s1, 8  ;;  %s210_s9 = int_to_ptr.hbm [resolvable:$true] %s209_s9 }
  0x20   : > { %s641_s11 = sshra.s32 %s210_s9, 4  ;;  %s642_s11 = int_to_ptr.hbm [resolvable:$true] %s641_s11 }
  0x21   : > { %s643_s15 = scalar_lea.hbm %s642_s11, 8 }
  0x22   : > { %p644_p4 = scmp.ne.s32.totalorder %s642_s11, %s643_s15  ;;  %p650_p9 = scmp.lt.s32.totalorder %s648_s25, %s643_s15 }
  0x24   : > { %p646_p7 = pnand %p645_p5, %p644_p4 }
  0x26   : > { %p647_p8 = pneg %p646_p7 }
  0x28   : > { %p652_p10 = pnand %p650_p9, %p647_p8 }
  0x2a   : > { %655 = shalt.err (!%p652_p10)
}
  0x2b   : > { %552 = dma.hbm_to_vmem [thread:$0]  (!%p944_p2), %s210_s9, 128, %s212_s6, %s953_s10  }
  0x2c   : > { %p238_p11 = scmp.lt.s32.totalorder %s838_s19, 3  ;;  %s841_s4 = smov [#allocation2]  }
  0x2d   : > { %s189_s5 = sshll.u32 %s841_s4, 4  ;;  %s187_s11 = sshll.u32 %s1079_s0, 4  ;;  %s190_s5 = int_to_ptr.vmem [resolvable:$true] %s189_s5  ;;  %s188_s11 = int_to_ptr.hbm [resolvable:$true] %s187_s11 }
  0x2e   : > { %p969_p1 = pnand %p525_p3, %p238_p11  ;;  %s671_s15 = sshra.s32 %s188_s11, 4  ;;  %s672_s15 = int_to_ptr.hbm [resolvable:$true] %s671_s15 }
  0x2f   : > { %s673_s21 = scalar_lea.hbm %s672_s15, 8  ;;  %s678_s23 = scalar_lea.hbm %s1079_s0, 8 }
  0x30   : > { %p674_p4 = scmp.ne.s32.totalorder %s672_s15, %s673_s21  ;;  %p680_p3 = scmp.lt.s32.totalorder %s678_s23, %s673_s21 }
  0x32   : > { %p676_p7 = pnand %p674_p4, %p645_p5 }
  0x34   : > { %p677_p8 = pneg %p676_p7 }
  0x36   : > { %p682_p9 = pnand %p680_p3, %p677_p8 }
  0x38   : > { %685 = shalt.err (!%p682_p9)
}
  0x39   : > { %549 = dma.hbm_to_vmem [thread:$0]  (!%p944_p2), %s188_s11, 128, %s190_s5, [#allocation3]  }
  0x3a   : > { %s842_s25 = smov [#allocation7]   ;;  %s231_s15 = sshll.u32 %s1081_s2, 4  ;;  %s232_s15 = int_to_ptr.hbm [resolvable:$true] %s231_s15 }
  0x3b   : > { %s233_s4 = sshll.u32 %s842_s25, 4  ;;  %s701_s1 = sshra.s32 %s232_s15, 4  ;;  %s234_s4 = int_to_ptr.vmem [resolvable:$true] %s233_s4  ;;  %s702_s1 = int_to_ptr.hbm [resolvable:$true] %s701_s1 }
  0x3c   : > { %s703_s22 = scalar_lea.hbm %s702_s1, 8  ;;  %s708_s5 = scalar_lea.hbm %s1081_s2, 8 }
  0x3d   : > { %p704_p10 = scmp.ne.s32.totalorder %s702_s1, %s703_s22  ;;  %p710_p7 = scmp.lt.s32.totalorder %s708_s5, %s703_s22 }
  0x3f   : > { %p706_p11 = pnand %p704_p10, %p645_p5 }
  0x41   : > { %p707_p4 = pneg %p706_p11 }
  0x43   : > { %p712_p8 = pnand %p710_p7, %p707_p4 }
  0x45   : > { %715 = shalt.err (!%p712_p8)
}
  0x46   : > { %555 = dma.hbm_to_vmem [thread:$0]  (!%p944_p2), %s232_s15, 128, %s234_s4, %s953_s10  }
  0x47   : > { %242 = sbr.rel (%p969_p1) target bundleno = 159 (0x9f), region = 32  ;;  %s244_s1 = sand.u32 (!%p969_p1), 1, %s826_s16  }
  0x48   : > { %s999_s11 = sshll.u32 (!%p969_p1), %s244_s1, 3  ;;  %s245_s9 = scalar_lea.sflag (!%p969_p1), [#allocation3], %s244_s1 }
  0x49   : > { %s248_s23 = scalar_lea.vmem (!%p969_p1), [#allocation2], %s999_s11 }
  0x4c   : > { %796 = dma.done.wait (%p917_p6), %s245_s9, 128  }
  0x4d   : > { %798 = vsyncadd (%p917_p6), %s245_s9, 4294967168  ;;  %s254_s22 = sand.u32 1, %s903_s20   ;;  %s258_s10 = scalar_lea.vmem [#allocation5], %s999_s11 }
  0x4e   : > { %s255_s30 = scalar_lea.sflag [#allocation6], %s254_s22 }
  0x4f   : > { %800 = dma.done.wait (%p917_p6), %s255_s30, 256  }
  0x50   : > { %802 = vsyncadd (%p917_p6), %s255_s30, 4294967040  ;;  %s1013_s26 = sshll.u32 %s830_s17, 3  ;;  %v316_v0 = vld [vmem:[%s248_s23] sm:$0xff]  ;;  %s299_s4 = sand.u32 1, %s814_s13   ;;  %v843_v4 = vmov 0.0   ;;  %v317_v18 = vld [vmem:[%s258_s10] sm:$0xff] }
  0x51   : > { %s355_s25 = sadd.s32 8, %s1013_s26  ;;  %v530_v1 = vmul.f32 -1.442695, %v316_v0  ;;  %s529_s20 = sshll.u32 %s299_s4, 3  ;;  %v344_v22 = vmax.f32 %v316_v0, 0.0  ;;  %v345_v23 = vmul.f32 %v317_v18, %v316_v0 }
  0x52   : > { %s1019_s7 = scalar_lea.vmem [#allocation8], %s529_s20  ;;  %s268_s17 = scalar_lea.vmem [#allocation7], %s999_s11 }
  0x53   : > { %635 = vpow2.f32 %v530_v1  ;;  %315 = vst [vmem:[%s1019_s7] sm:$0xff] %v843_v4  ;;  %v318_v15 = vld [vmem:[%s268_s17] sm:$0xff]  ;;  %v346_v26 = vsub.f32 %v344_v22, %v345_v23  ;;  %p532_p6 = scmp.gt.s32.totalorder %s355_s25, 8 }
  0x54   : > { %v340_v21 = vsub.f32 1.0, %v318_v15  ;;  %v342_v25 = vmul.f32 %v318_v15, %v317_v18 }
  0x59   : > { %v636_v2 = vpop.eup %635 }
  0x5a   : > { %v322_v3 = vadd.f32 1.0, %v636_v2 }
  0x5c   : > { %637 = vrcp.f32 %v322_v3  ;;  %v334_v7 = vand.u32 2147483648, %v322_v3  ;;  %vm328_vm0 = vweird.f32 %v322_v3  ;;  %v332_v9 = vand.u32 2147483647, %v322_v3 }
  0x5e   : > { %v335_v11 = vor.u32 1.1754944e-38, %v334_v7  ;;  %vm333_vm3 = vcmp.eq.f32.partialorder %v332_v9, 8.507059e+37 }
  0x62   : > { %v638_v5 = vpop.eup %637 }
  0x63   : > { %v324_v6 = vmul.f32 %v638_v5, %v322_v3  ;;  %vm329_vm1 = vweird.f32 %v638_v5 }
  0x64   : > { %vm330_vm2 = vmor %vm328_vm0, %vm329_vm1 }
  0x65   : > { %v325_v8 = vsub.f32 1.0, %v324_v6 }
  0x67   : > { %v326_v10 = vmul.f32 %v638_v5, %v325_v8 }
  0x69   : > { %v327_v12 = vadd.f32 %v638_v5, %v326_v10 }
  0x6b   : > { %v331_v13 = vsel %vm330_vm2, %v638_v5, %v327_v12 }
  0x6c   : > { %v336_v14 = vsel %vm333_vm3, %v335_v11, %v331_v13 }
  0x6d   : > { %v338_v16 = vmul.f32 %v336_v14, %v336_v14  ;;  %v347_v17 = vsub.f32 1.0, %v336_v14 }
  0x6f   : > { %v348_v19 = vmax.f32 %v336_v14, %v347_v17  ;;  %v339_v20 = vmul.f32 0.75, %v338_v16 }
  0x71   : > { %639 = vlog2.f32 %v348_v19  ;;  %v341_v24 = vmul.f32 %v340_v21, %v339_v20 }
  0x73   : > { %v343_v28 = vadd.f32 %v342_v25, %v341_v24 }
  0x77   : > { %v640_v27 = vpop.eup %639 }
  0x78   : > { %v350_v29 = vmul.f32 0.6931472, %v640_v27  ;;  %359 = sbr.rel (%p532_p6) target bundleno = 129 (0x81), region = 52 }
  0x7a   : > { %v351_v30 = vsub.f32 %v346_v26, %v350_v29 }
  0x7c   : > { %v352_v31 = vmul.f32 %v351_v30, %v343_v28 }
  0x7d   : > { %v360_v32 = vld [vmem:[%s1019_s7] sm:$0xff] }
  0x7e   : > { %v362_v33 = vadd.f32 %v360_v32, %v352_v31 }
  0x80   : > { %363 = vst [vmem:[%s1019_s7] sm:$0xff] %v362_v33 }
  0x81 PF: > { %p533_p2 = scmp.le.s32.totalorder %s355_s25, 8 }
  0x82   : > { %s370_s24 = ssub.s32 (!%p533_p2), 8, %s1013_s26 }
  0x83   : > { %367 = sbr.rel (%p533_p2) target bundleno = 145 (0x91), region = 56 }
  0x88   : > { %v368_v34 = vlaneseq  ;;  %v371_v35 = vstv %s370_s24  ;;  %v374_v37 = vld [vmem:[%s1019_s7] sm:$0xff] }
  0x8a   : > { %v369_v36 = vshrl.u32 %v368_v34, 7 }
  0x8c   : > { %vm372_vm4 = vcmp.lt.s32.totalorder %v369_v36, %v371_v35 }
  0x8d   : > { %v373_v38 = vsel %vm372_vm4, %v352_v31, 0.0 }
  0x8e   : > { %v376_v39 = vadd.f32 %v374_v37, %v373_v38 }
  0x90   : > { %377 = vst [vmem:[%s1019_s7] sm:$0xff] %v376_v39 }
  0x91 PF: > { %s389_s21 = scalar_lea.hbm %s1082_s3, %s1013_s26  ;;  %s391_s6 = sshll.u32 %s1019_s7, 4  ;;  %s392_s6 = int_to_ptr.vmem [resolvable:$true] %s391_s6 }
  0x92   : > { %s393_s5 = sshll.u32 %s389_s21, 4  ;;  %s379_s1 = scalar_lea.sflag [#allocation4], %s299_s4  ;;  %s394_s5 = int_to_ptr.hbm [resolvable:$true] %s393_s5 }
  0x93   : > { %s745_s11 = sshra.s32 %s394_s5, 4  ;;  %s751_s30 = scalar_lea.hbm %s1082_s3, 16  ;;  %s746_s11 = int_to_ptr.hbm [resolvable:$true] %s745_s11 }
  0x94   : > { %s747_s9 = scalar_lea.hbm %s746_s11, 8  ;;  %p752_p9 = scmp.lt.s32.totalorder %s746_s11, %s1082_s3 }
  0x95   : > { %p748_p5 = scmp.ne.s32.totalorder %s746_s11, %s747_s9  ;;  %p753_p10 = scmp.lt.s32.totalorder %s751_s30, %s747_s9 }
  0x97   : > { %p749_p1 = pnand %p748_p5, %p932_p12  ;;  %p754_p11 = por %p753_p10, %p752_p9 }
  0x99   : > { %p750_p3 = pneg %p749_p1 }
  0x9b   : > { %p755_p4 = pnand %p754_p11, %p750_p3 }
  0x9d   : > { %758 = shalt.err (!%p755_p4)
}
  0x9e   : > { %544 = dma.vmem_to_hbm [thread:$0]  (%p932_p12), %s392_s6, 128, %s394_s5, %s379_s1  }
  0x9f PF: > { %s405_s26 = sand.u32 1, %s810_s12   ;;  %p557_p7 = pnand %p518_p13, %p937_p0 }
  0xa0   : > { %s406_s4 = scalar_lea.sflag [#allocation4], %s405_s26 }
  0xa1   : > { %p558_p8 = pneg %p557_p7 }
  0xa3   : > { %804 = dma.done.wait (%p558_p8), %s406_s4, 128  }
  0xa4   : > { %806 = vsyncadd (%p558_p8), %s406_s4, 4294967168  ;;  %s22_s19 = sadd.s32 1, %s838_s19   ;;  %s1093_s28 = sld [smem:[#allocation12_spill]] }
  0xa5   : > { %p19_p6 = scmp.ge.s32.totalorder %s22_s19, 4   ;;  %s1094_s12 = smov %s814_s13 }
  0xa6   : > { %s1095_s13 = smov %s818_s14  ;;  %s1096_s14 = smov %s925_s27 }
  0xa7   : > { %s1097_s15 = smov %s826_s16  ;;  %s1069_s16 = smov 0  }
  0xa8   : > { %s1098_s17 = smov %s834_s18  ;;  %21 = sbr.rel (!%p19_p6) target bundleno = 11 (0xb), region = 113 }
  0xaa   : > { %s1099_s18 = smov %s1093_s28 }
  0xad   :  { %412 = vsyncpa [#allocation3], 1 }
  0xae   :  { %414 = vsyncpa [#allocation3 + $0x1], 1 }
  0xaf   :  { %415 = vsyncpa [#allocation6], 1 }
  0xb0   :  { %417 = vsyncpa [#allocation6 + $0x1], 1 }
  0xb1   :  { %418 = vsyncpa [#allocation4], 1 }
  0xb2   :  { %420 = vsyncpa [#allocation4 + $0x1], 1 }

</bundles_post_ra>
